<compile_context>
chip_gen: v5e
topology: v5e:2x2
jax: 0.10.0
libtpu: 0.0.40
codegen_flags: <defaults>
</compile_context>

<pallas_src>
import functools

import jax
import jax.numpy as jnp
from jax.experimental import pallas as pl
from jax.experimental.pallas import tpu as pltpu

BN_EPS = 1e-5


def _round_up(x, m):
    return (x + m - 1) // m * m


# ------------------------------- kernels -------------------------------------

def stats_kernel(x_ref, w_ref, stats_ref):
    """Pass 1: Y_tile = X_tile @ Wf, emit per-tile (sum, sum-of-squares).

    x_ref:     (TM, Cin)     bf16
    w_ref:     (Cin, 4*Cp)   bf16  (constant index_map -> VMEM resident)
    stats_ref: (1, 2, 4*Cp)  f32   per-tile partial statistics
    """
    y = jnp.dot(x_ref[...], w_ref[...], preferred_element_type=jnp.float32)
    stats_ref[0, 0:1, :] = jnp.sum(y, axis=0, keepdims=True)
    stats_ref[0, 1:2, :] = jnp.sum(y * y, axis=0, keepdims=True)


def apply_kernel(x_ref, w_ref, scale_ref, shift_ref, o_ref):
    """Pass 2: Y_tile = X_tile @ Wf, fused BatchNorm (scale/shift) + ReLU.

    scale = gamma * rsqrt(var + eps), shift = beta - mean * scale (f32).
    """
    y = jnp.dot(x_ref[...], w_ref[...], preferred_element_type=jnp.float32)
    y = y * scale_ref[...] + shift_ref[...]
    o_ref[...] = jnp.maximum(y, 0.0).astype(o_ref.dtype)


# -------------------------------- wrapper ------------------------------------

@functools.partial(jax.jit, static_argnames=("tile_m",))
def trans_conv(x_nchw, w_t, b, gamma, beta, *, tile_m=512):
    """TransConv forward.

    x_nchw: (N, Cin, H, W); w_t: (Cin, Cout, 2, 2) [PyTorch ConvTranspose2d
    layout]; b/gamma/beta: (Cout,).  Returns (N, Cout, 2H, 2W).
    """
    del b  # bias before training-mode BatchNorm cancels exactly (mean removal)
    N, Cin, H, W = x_nchw.shape
    Cout = w_t.shape[1]
    M = N * H * W

    # Lane-dense channel padding: 4*Cp is a multiple of 128.
    Cp = _round_up(Cout, 32)
    lanes = 4 * Cp

    # Fold the 4 taps into the output dim: Wf[cin, tap*Cp + c] = w_t[cin,c,dy,dx]
    w4 = jnp.transpose(w_t, (2, 3, 0, 1))                       # (2,2,Cin,Cout)
    w4 = jnp.pad(w4, ((0, 0), (0, 0), (0, 0), (0, Cp - Cout)))
    w_f = jnp.transpose(w4.reshape(4, Cin, Cp), (1, 0, 2)).reshape(Cin, lanes)
    w_f = w_f.astype(jnp.bfloat16)

    # Rows = N*H*W on sublanes, channels on lanes.  Pad rows to the tile size;
    # zero rows contribute exactly zero to sum/sumsq (no bias), so stats stay
    # exact; padded output rows are sliced off below.
    tm = min(tile_m, _round_up(M, 16))
    m_pad = _round_up(M, tm)
    nt = m_pad // tm
    x = jnp.transpose(x_nchw, (0, 2, 3, 1)).reshape(M, Cin)
    x = jnp.pad(x, ((0, m_pad - M), (0, 0))).astype(jnp.bfloat16)

    parallel = pltpu.CompilerParams(dimension_semantics=("parallel",))
    matmul_flops = 2 * m_pad * Cin * lanes

    # ---- pass 1: per-tile sum / sum-of-squares ------------------------------
    stats = pl.pallas_call(
        stats_kernel,
        out_shape=jax.ShapeDtypeStruct((nt, 2, lanes), jnp.float32),
        grid=(nt,),
        in_specs=[pl.BlockSpec((tm, Cin), lambda i: (i, 0)),
                  pl.BlockSpec((Cin, lanes), lambda i: (0, 0))],
        out_specs=pl.BlockSpec((1, 2, lanes), lambda i: (i, 0, 0)),
        compiler_params=parallel,
        cost_estimate=pl.CostEstimate(
            flops=matmul_flops, transcendentals=0,
            bytes_accessed=x.size * 2 + w_f.size * 2 + nt * 2 * lanes * 4),
    )(x, w_f)

    # ---- tiny cross-tile reduction + BN coefficients (f32) ------------------
    total = stats.sum(axis=0).reshape(2, 4, Cp).sum(axis=1)     # (2, Cp)
    count = jnp.float32(N * (2 * H) * (2 * W))
    mean = total[0] / count
    var = jnp.maximum(total[1] / count - mean * mean, 0.0)      # biased var
    gamma_p = jnp.pad(gamma.astype(jnp.float32), (0, Cp - Cout),
                      constant_values=1.0)
    beta_p = jnp.pad(beta.astype(jnp.float32), (0, Cp - Cout))
    scale = gamma_p * jax.lax.rsqrt(var + BN_EPS)
    shift = beta_p - mean * scale
    scale_l = jnp.tile(scale, 4).reshape(1, lanes)              # tap-major
    shift_l = jnp.tile(shift, 4).reshape(1, lanes)

    # ---- pass 2: recompute matmul, fused BN + ReLU, lane-dense stores -------
    y = pl.pallas_call(
        apply_kernel,
        out_shape=jax.ShapeDtypeStruct((m_pad, lanes), jnp.float32),
        grid=(nt,),
        in_specs=[pl.BlockSpec((tm, Cin), lambda i: (i, 0)),
                  pl.BlockSpec((Cin, lanes), lambda i: (0, 0)),
                  pl.BlockSpec((1, lanes), lambda i: (0, 0)),
                  pl.BlockSpec((1, lanes), lambda i: (0, 0))],
        out_specs=pl.BlockSpec((tm, lanes), lambda i: (i, 0)),
        compiler_params=parallel,
        cost_estimate=pl.CostEstimate(
            flops=matmul_flops, transcendentals=0,
            bytes_accessed=x.size * 2 + w_f.size * 2 + m_pad * lanes * 4),
    )(x, w_f, scale_l, shift_l)

    # ---- scatter the 2x2 tap blocks back into (N, Cout, 2H, 2W) -------------
    y = y[:M].reshape(N, H, W, 2, 2, Cp)[..., :Cout]
    y = jnp.transpose(y, (0, 1, 3, 2, 4, 5)).reshape(N, 2 * H, 2 * W, Cout)
    return jnp.transpose(y, (0, 3, 1, 2))


# --------------------------- pure-JAX reference -------------------------------

def reference(x_nchw, w_t, b, gamma, beta):
    """ConvTranspose2d(k=2,s=2) + bias -> BatchNorm2d(train) -> ReLU (XLA)."""
    x = jnp.transpose(x_nchw, (0, 2, 3, 1))
    # stride-2 transposed conv == conv over the 2x-dilated input with the
    # spatially flipped kernel and (k-1)=1 padding on each side.
    k = jnp.flip(jnp.transpose(w_t, (2, 3, 0, 1)), axis=(0, 1))  # HWIO, flipped
    y = jax.lax.conv_general_dilated(
        x, k, window_strides=(1, 1), padding=((1, 1), (1, 1)),
        lhs_dilation=(2, 2),
        dimension_numbers=('NHWC', 'HWIO', 'NHWC')) + b
    mean = jnp.mean(y, axis=(0, 1, 2), keepdims=True)
    var = jnp.mean(jnp.square(y - mean), axis=(0, 1, 2), keepdims=True)
    y = (y - mean) * jax.lax.rsqrt(var + BN_EPS) * gamma + beta
    y = jnp.maximum(y, 0.0)
    return jnp.transpose(y, (0, 3, 1, 2))


# ---------------------------------- main --------------------------------------

if __name__ == "__main__":
    in_ch, out_ch = 4, 8
    N, H, W = 2, 16, 16

    key = jax.random.PRNGKey(0)
    k0, k1, k2 = jax.random.split(key, 3)

    x = jax.random.normal(k0, (N, in_ch, H, W), jnp.float32)
    # PyTorch ConvTranspose2d weight layout: (in_ch, out_ch, kH, kW).
    w_t = 0.1 * jax.random.normal(k1, (in_ch, out_ch, 2, 2), jnp.float32)
    b = 0.1 * jax.random.normal(k2, (out_ch,), jnp.float32)
    gamma = jnp.ones((out_ch,), jnp.float32)   # BatchNorm2d default init
    beta = jnp.zeros((out_ch,), jnp.float32)

    # Small tile so the toy problem exercises the multi-tile BN reduction path.
    out = trans_conv(x, w_t, b, gamma, beta, tile_m=256)
    out = jax.block_until_ready(out)
    assert out.shape == (N, out_ch, 2 * H, 2 * W), out.shape

    # Check 1: full-f32 reference (bf16 MXU operands -> relaxed tolerance).
    ref32 = reference(x, w_t, b, gamma, beta)
    assert jnp.allclose(out, ref32, rtol=3e-2, atol=3e-2), \
        float(jnp.max(jnp.abs(out - ref32)))

    # Check 2: reference fed the same bf16-quantized operands (isolates the
    # kernel structure from the intentional bf16 quantization) -> tight tol.
    xq = x.astype(jnp.bfloat16).astype(jnp.float32)
    wq = w_t.astype(jnp.bfloat16).astype(jnp.float32)
    refq = reference(xq, wq, b, gamma, beta)
    assert jnp.allclose(out, refq, rtol=2e-3, atol=2e-3), \
        float(jnp.max(jnp.abs(out - refq)))

    print("KERNEL_OK")
</pallas_src>

<mosaic_0001>
module attributes {stable_mosaic.version = 11 : i64} {
  func.func @stats_kernel(%arg0: i32, %arg1: memref<256x4xbf16, #tpu.memory_space<vmem>>, %arg2: memref<4x128xbf16, #tpu.memory_space<vmem>>, %arg3: memref<1x2x128xf32, #tpu.memory_space<vmem>>) attributes {dimension_semantics = [#tpu.dimension_semantics<parallel>], iteration_bounds = array<i64: 2>, scalar_prefetch = 0 : i64, scratch_operands = 0 : i64, tpu.core_type = #tpu.core_type<tc>, window_params = [{transform_indices = @transform_0, window_bounds = array<i64: 256, 4>}, {pipeline_mode = #tpu.pipeline_mode<synchronous>, transform_indices = @transform_1, window_bounds = array<i64: 4, 128>}, {transform_indices = @transform_2, window_bounds = array<i64: 1, 2, 128>}]} {
    %c0 = arith.constant 0 : index
    %c0_0 = arith.constant 0 : index
    %0 = vector.load %arg1[%c0, %c0_0] : memref<256x4xbf16, #tpu.memory_space<vmem>>, vector<256x4xbf16>
    %c0_1 = arith.constant 0 : index
    %c0_2 = arith.constant 0 : index
    %1 = vector.load %arg2[%c0_1, %c0_2] : memref<4x128xbf16, #tpu.memory_space<vmem>>, vector<4x128xbf16>
    %cst = arith.constant dense<0.000000e+00> : vector<256x128xf32>
    %2 = tpu.matmul %0, %1, %cst {dimension_numbers = #tpu.dot_dimension_numbers<[1], [0], [0], [1], [0, 0, 1, 1], [], []>} : vector<256x4xbf16>, vector<4x128xbf16>, vector<256x128xf32> -> vector<256x128xf32>
    %cst_3 = arith.constant dense<0.000000e+00> : vector<128xf32>
    %3 = vector.multi_reduction <add>, %2, %cst_3 [0] : vector<256x128xf32> to vector<128xf32>
    %4 = vector.shape_cast %3 : vector<128xf32> to vector<1x128xf32>
    %c0_4 = arith.constant 0 : index
    %c0_5 = arith.constant 0 : index
    %c0_6 = arith.constant 0 : index
    %5 = vector.load %arg3[%c0_4, %c0_5, %c0_6] : memref<1x2x128xf32, #tpu.memory_space<vmem>>, vector<1x1x128xf32>
    %6 = vector.shape_cast %5 : vector<1x1x128xf32> to vector<1x128xf32>
    %7 = vector.shape_cast %4 : vector<1x128xf32> to vector<1x1x128xf32>
    tpu.vector_store %arg3[%c0_4, %c0_5, %c0_6], %7 {strides = array<i32>} : memref<1x2x128xf32, #tpu.memory_space<vmem>>, vector<1x1x128xf32>,
    %8 = arith.mulf %2, %2 : vector<256x128xf32>
    %cst_7 = arith.constant dense<0.000000e+00> : vector<128xf32>
    %9 = vector.multi_reduction <add>, %8, %cst_7 [0] : vector<256x128xf32> to vector<128xf32>
    %10 = vector.shape_cast %9 : vector<128xf32> to vector<1x128xf32>
    %c0_8 = arith.constant 0 : index
    %c1 = arith.constant 1 : index
    %c0_9 = arith.constant 0 : index
    %11 = vector.load %arg3[%c0_8, %c1, %c0_9] : memref<1x2x128xf32, #tpu.memory_space<vmem>>, vector<1x1x128xf32>
    %12 = vector.shape_cast %11 : vector<1x1x128xf32> to vector<1x128xf32>
    %13 = vector.shape_cast %10 : vector<1x128xf32> to vector<1x1x128xf32>
    tpu.vector_store %arg3[%c0_8, %c1, %c0_9], %13 {strides = array<i32>} : memref<1x2x128xf32, #tpu.memory_space<vmem>>, vector<1x1x128xf32>,
    return
  }
  func.func @transform_0(%arg0: i32) -> (i32, i32) {
    %c0_i32 = arith.constant 0 : i32
    %c0_i32_0 = arith.constant 0 : i32
    return %arg0, %c0_i32 : i32, i32
  }
  func.func @transform_1(%arg0: i32) -> (i32, i32) {
    %c0_i32 = arith.constant 0 : i32
    %c0_i32_0 = arith.constant 0 : i32
    %c0_i32_1 = arith.constant 0 : i32
    return %c0_i32, %c0_i32_0 : i32, i32
  }
  func.func @transform_2(%arg0: i32) -> (i32, i32, i32) {
    %c0_i32 = arith.constant 0 : i32
    %c0_i32_0 = arith.constant 0 : i32
    %c0_i32_1 = arith.constant 0 : i32
    return %arg0, %c0_i32, %c0_i32_0 : i32, i32, i32
  }
}

module attributes {stable_mosaic.version = 11 : i64} {
  func.func @apply_kernel(%arg0: i32, %arg1: memref<256x4xbf16, #tpu.memory_space<vmem>>, %arg2: memref<4x128xbf16, #tpu.memory_space<vmem>>, %arg3: memref<1x128xf32, #tpu.memory_space<vmem>>, %arg4: memref<1x128xf32, #tpu.memory_space<vmem>>, %arg5: memref<256x128xf32, #tpu.memory_space<vmem>>) attributes {dimension_semantics = [#tpu.dimension_semantics<parallel>], iteration_bounds = array<i64: 2>, scalar_prefetch = 0 : i64, scratch_operands = 0 : i64, tpu.core_type = #tpu.core_type<tc>, window_params = [{transform_indices = @transform_0, window_bounds = array<i64: 256, 4>}, {pipeline_mode = #tpu.pipeline_mode<synchronous>, transform_indices = @transform_1, window_bounds = array<i64: 4, 128>}, {pipeline_mode = #tpu.pipeline_mode<synchronous>, transform_indices = @transform_2, window_bounds = array<i64: 1, 128>}, {pipeline_mode = #tpu.pipeline_mode<synchronous>, transform_indices = @transform_3, window_bounds = array<i64: 1, 128>}, {transform_indices = @transform_4, window_bounds = array<i64: 256, 128>}]} {
    %c0 = arith.constant 0 : index
    %c0_0 = arith.constant 0 : index
    %0 = vector.load %arg1[%c0, %c0_0] : memref<256x4xbf16, #tpu.memory_space<vmem>>, vector<256x4xbf16>
    %c0_1 = arith.constant 0 : index
    %c0_2 = arith.constant 0 : index
    %1 = vector.load %arg2[%c0_1, %c0_2] : memref<4x128xbf16, #tpu.memory_space<vmem>>, vector<4x128xbf16>
    %cst = arith.constant dense<0.000000e+00> : vector<256x128xf32>
    %2 = tpu.matmul %0, %1, %cst {dimension_numbers = #tpu.dot_dimension_numbers<[1], [0], [0], [1], [0, 0, 1, 1], [], []>} : vector<256x4xbf16>, vector<4x128xbf16>, vector<256x128xf32> -> vector<256x128xf32>
    %c0_3 = arith.constant 0 : index
    %c0_4 = arith.constant 0 : index
    %3 = vector.load %arg3[%c0_3, %c0_4] : memref<1x128xf32, #tpu.memory_space<vmem>>, vector<1x128xf32>
    %4 = vector.broadcast %3 : vector<1x128xf32> to vector<256x128xf32>
    %5 = arith.mulf %2, %4 : vector<256x128xf32>
    %c0_5 = arith.constant 0 : index
    %c0_6 = arith.constant 0 : index
    %6 = vector.load %arg4[%c0_5, %c0_6] : memref<1x128xf32, #tpu.memory_space<vmem>>, vector<1x128xf32>
    %7 = vector.broadcast %6 : vector<1x128xf32> to vector<256x128xf32>
    %8 = arith.addf %5, %7 : vector<256x128xf32>
    %cst_7 = arith.constant 0.000000e+00 : f32
    %9 = vector.broadcast %cst_7 : f32 to vector<256x128xf32>
    %10 = arith.maximumf %8, %9 : vector<256x128xf32>
    %c0_8 = arith.constant 0 : index
    %c0_9 = arith.constant 0 : index
    %11 = vector.load %arg5[%c0_8, %c0_9] : memref<256x128xf32, #tpu.memory_space<vmem>>, vector<256x128xf32>
    tpu.vector_store %arg5[%c0_8, %c0_9], %10 {strides = array<i32>} : memref<256x128xf32, #tpu.memory_space<vmem>>, vector<256x128xf32>,
    return
  }
  func.func @transform_0(%arg0: i32) -> (i32, i32) {
    %c0_i32 = arith.constant 0 : i32
    %c0_i32_0 = arith.constant 0 : i32
    return %arg0, %c0_i32 : i32, i32
  }
  func.func @transform_1(%arg0: i32) -> (i32, i32) {
    %c0_i32 = arith.constant 0 : i32
    %c0_i32_0 = arith.constant 0 : i32
    %c0_i32_1 = arith.constant 0 : i32
    return %c0_i32, %c0_i32_0 : i32, i32
  }
  func.func @transform_2(%arg0: i32) -> (i32, i32) {
    %c0_i32 = arith.constant 0 : i32
    %c0_i32_0 = arith.constant 0 : i32
    %c0_i32_1 = arith.constant 0 : i32
    return %c0_i32, %c0_i32_0 : i32, i32
  }
  func.func @transform_3(%arg0: i32) -> (i32, i32) {
    %c0_i32 = arith.constant 0 : i32
    %c0_i32_0 = arith.constant 0 : i32
    %c0_i32_1 = arith.constant 0 : i32
    return %c0_i32, %c0_i32_0 : i32, i32
  }
  func.func @transform_4(%arg0: i32) -> (i32, i32) {
    %c0_i32 = arith.constant 0 : i32
    %c0_i32_0 = arith.constant 0 : i32
    return %arg0, %c0_i32 : i32, i32
  }
}

</mosaic_0001>

<bundles_post_ra>
// kernel: tile.18
= control target key start
LH: loop header
LB: loop body
LE: loop exit
PB: predicated region body
PF: predicated region fallthrough
CT: control target
= control target key end

     0   :  { %s22_s0 = inlined_call_operand.vmem [shape: f32[32], index: 0, kind: input, shape index: {}]   ;;  %s23_s1 = inlined_call_operand.vmem [shape: f32[4,32], index: 1, kind: output, shape index: {}]  }
   0x1   :  { %v4_v0 = vld [vmem:[%s22_s0] ss:$0 sm:$0xff] }
   0x2   :  { %5 = vst [vmem:[%s23_s1] sm:$0xf] %v4_v0 }

// kernel: tile.19
= control target key start
LH: loop header
LB: loop body
LE: loop exit
PB: predicated region body
PF: predicated region fallthrough
CT: control target
= control target key end

     0   :  { %s37_s8 = smov 32   ;;  %s38_s9 = smov 64   ;;  %vm7_vm0 = vcmask 261120   ;;  %vm13_vm1 = vcmask 1048320   ;;  %vm19_vm2 = vcmask 785920   ;;  %vm25_vm3 = vcmask 523520   ;;  %s55_s0 = inlined_call_operand.vmem [shape: f32[4,32], index: 0, kind: input, shape index: {}]   ;;  %s56_s1 = inlined_call_operand.vmem [shape: f32[1,128], index: 1, kind: output, shape index: {}]  }
   0x1   :  { %v4_v0 = vld [vmem:[%s55_s0] sm:$0xf]  ;;  %s36_s0 = smov 96  }
   0x2   :  { %5 = vst [vmem:[#allocation1] sm:$0xf] %v4_v0 }
   0x9   :  { %v10_v1 = vld [vmem:[#allocation1 + $0x3] sm:$0x1]   ;;  %v22_v2 = vld [vmem:[#allocation1 + $0x1] sm:$0x1]   ;;  %v16_v3 = vld [vmem:[#allocation1 + $0x2] sm:$0x1]  }
   0xa   :  { %11 = vrot.lane.b32.xlu0 %v10_v1, %s36_s0  ;;  %23 = vrot.lane.b32.xlu1 %v22_v2, %s37_s8  ;;  %v6_v4 = vld [vmem:[#allocation1] sm:$0x1]  }
   0xb   :  { %8 = vst.msk [vmem:[#allocation0] sm:$0x1] %vm7_vm0, %v6_v4  }
  0x12   :  { %17 = vrot.lane.b32.xlu0 %v16_v3, %s38_s9 }
  0x7c   :  { %v12_v5 = vpop.permute.xlu0 %11   ;;  %v24_v6 = vpop.permute.xlu1 %23  }
  0x7d   :  { %14 = vst.msk [vmem:[#allocation0] sm:$0x1] %vm13_vm1, %v12_v5  }
  0x84   :  { %v18_v7 = vpop.permute.xlu0 %17  }
  0x85   :  { %20 = vst.msk [vmem:[#allocation0] sm:$0x1] %vm19_vm2, %v18_v7  }
  0x86   :  { %26 = vst.msk [vmem:[#allocation0] sm:$0x1] %vm25_vm3, %v24_v6  }
  0x8d   :  { %v29_v8 = vld [vmem:[#allocation0] sm:$0x1] }
  0x8e   :  { %32 = vst [vmem:[%s56_s1] sm:$0x1] %v29_v8 }

// kernel: trans_conv.2
= control target key start
LH: loop header
LB: loop body
LE: loop exit
PB: predicated region body
PF: predicated region fallthrough
CT: control target
= control target key end

     0   :  { %s701_s9 = smov 0   ;;  %s777_s0 = inlined_call_operand.vmem [shape: bf16[512,4], index: 0, kind: input, shape index: {}]   ;;  %s778_s1 = inlined_call_operand.vmem [shape: bf16[4,128], index: 1, kind: input, shape index: {}]   ;;  %s779_s2 = inlined_call_operand.vmem [shape: f32[2,2,128], index: 2, kind: output, shape index: {}]  }
   0x1 LB: > { %s707_s10 = sadd.s32 4294967295, %s684_s9   ;;  %p565_p0 = scmp.ge.s32.totalorder %s684_s9, 1  ;;  %s684_s9 = sphi %s701_s9, %s12_s9  }
   0x2   : > { %p113_p1 = scmp.lt.s32.totalorder %s684_s9, 3 }
   0x4   : > { %p114_p2 = pnand %p565_p0, %p113_p1 }
   0x5   : > { %s566_s13 = sshll.u32 (!%p114_p2), %s707_s10, 5  ;;  %p140_p4 = scmp.lt.s32.totalorder (!%p114_p2), %s707_s10, 1 }
   0x6   : > { %117 = sbr.rel (%p114_p2) target bundleno = 263 (0x107), region = 28  ;;  %p135_p3 = scmp.lt.s32.totalorder (!%p114_p2), %s566_s13, 63 }
   0xb   : > { %v177_v0 = vld [vmem:[%s778_s1] sm:$0x3]  ;;  %vm307_vm0 = vcmask 1041408   ;;  %s781_s13 = smov (!%p135_p3, %s566_s13), 63  ;;  %vm258_vm1 = vcmask 31744   ;;  %s783_s10 = smov (!%p140_p4, %s707_s10), 1 }
   0xc   : > { %v309_v1 = vsel %vm307_vm0, %v177_v0, 0  ;;  %s567_s14 = sshll.u32 %s781_s13, 2  ;;  %s568_s18 = sshll.u32 %s783_s10, 1 }
   0xd   : > { %318 = vmatpush.bf16.msra.mxu0 %v309_v1  ;;  %667 = vmatpush.bf16.msra.mxu1 %v309_v1  ;;  %s138_s17 = scalar_lea.vmem %s777_s0, %s567_s14  ;;  %s143_s21 = scalar_lea.vmem %s779_s2, %s568_s18 }
   0xe   : > { %668 = vmatpush.bf16.msra.mxu2 %v309_v1  ;;  %669 = vmatpush.bf16.msra.mxu3 %v309_v1  ;;  %v651_v2 = vld [vmem:[%s138_s17] sm:$0xff]  ;;  %v652_v6 = vld [vmem:[%s138_s17 + $0x8] sm:$0xff]  ;;  %v653_v10 = vld [vmem:[%s138_s17 + $0x10] sm:$0xff] }
   0xf   : > { %v655_v3 = vld [vmem:[%s138_s17 + $0x20] sm:$0xff]  ;;  %v656_v7 = vld [vmem:[%s138_s17 + $0x28] sm:$0xff]  ;;  %v657_v11 = vld [vmem:[%s138_s17 + $0x30] sm:$0xff] }
  0x10   : > { %v659_v4 = vld [vmem:[%s138_s17 + $0x40] sm:$0xff]  ;;  %633 = vmatmul.msk.bf16.vlgmr.msra.gmra.mxu0 %vm258_vm1, %v651_v2  ;;  %637 = vmatmul.msk.bf16.vlgmr.msra.gmra.mxu1 %vm258_vm1, %v655_v3  ;;  %v660_v8 = vld [vmem:[%s138_s17 + $0x48] sm:$0xff]  ;;  %v661_v12 = vld [vmem:[%s138_s17 + $0x50] sm:$0xff] }
  0x11   : > { %v663_v5 = vld [vmem:[%s138_s17 + $0x60] sm:$0xff]  ;;  %641 = vmatmul.msk.bf16.vlgmr.msra.gmra.mxu2 %vm258_vm1, %v659_v4  ;;  %v664_v9 = vld [vmem:[%s138_s17 + $0x68] sm:$0xff]  ;;  %v665_v13 = vld [vmem:[%s138_s17 + $0x70] sm:$0xff] }
  0x12   : > { %645 = vmatmul.msk.bf16.vlgmr.msra.gmra.mxu3 %vm258_vm1, %v663_v5  ;;  %v654_v14 = vld [vmem:[%s138_s17 + $0x18] sm:$0xff] }
  0x13   : > { %v658_v15 = vld [vmem:[%s138_s17 + $0x38] sm:$0xff] }
  0x14   : > { %v662_v16 = vld [vmem:[%s138_s17 + $0x58] sm:$0xff] }
  0x15   : > { %v666_v17 = vld [vmem:[%s138_s17 + $0x78] sm:$0xff] }
  0x20   : > { %634 = vmatmul.msk.bf16.gmra.mxu0 %vm258_vm1, %v652_v6  ;;  %638 = vmatmul.msk.bf16.gmra.mxu1 %vm258_vm1, %v656_v7 }
  0x21   : > { %642 = vmatmul.msk.bf16.gmra.mxu2 %vm258_vm1, %v660_v8 }
  0x22   : > { %646 = vmatmul.msk.bf16.gmra.mxu3 %vm258_vm1, %v664_v9 }
  0x30   : > { %635 = vmatmul.msk.bf16.gmra.mxu0 %vm258_vm1, %v653_v10  ;;  %639 = vmatmul.msk.bf16.gmra.mxu1 %vm258_vm1, %v657_v11 }
  0x31   : > { %643 = vmatmul.msk.bf16.gmra.mxu2 %vm258_vm1, %v661_v12 }
  0x32   : > { %647 = vmatmul.msk.bf16.gmra.mxu3 %vm258_vm1, %v665_v13 }
  0x40   : > { %636 = vmatmul.msk.bf16.gmra.mxu0 %vm258_vm1, %v654_v14  ;;  %640 = vmatmul.msk.bf16.gmra.mxu1 %vm258_vm1, %v658_v15 }
  0x41   : > { %644 = vmatmul.msk.bf16.gmra.mxu2 %vm258_vm1, %v662_v16 }
  0x42   : > { %648 = vmatmul.msk.bf16.gmra.mxu3 %vm258_vm1, %v666_v17 }
  0x8d   : > { %v320_v18 = vpop.f32.mrf.mxu0  ;;  %v340_v19 = vpop.f32.mrf.mxu1 }
  0x8e   : > { %v438_v35 = vmul.f32 %v320_v18, %v320_v18  ;;  %v446_v61 = vmul.f32 %v340_v19, %v340_v19 }
  0x94   : > { %v734_v23 = vpop.f32.mrf.mxu2 }
  0x95   : > { %v322_v20 = vpop.f32.mrf.mxu0  ;;  %v342_v21 = vpop.f32.mrf.mxu1 }
  0x96   : > { %v738_v29 = vpop.f32.mrf.mxu3  ;;  %v439_v34 = vmul.f32 %v322_v20, %v322_v20  ;;  %v400_v36 = vadd.f32 %v322_v20, %v320_v18  ;;  %v447_v1 = vmul.f32 %v342_v21, %v342_v21 }
  0x98   : > { %v470_v39 = vadd.f32 %v439_v34, %v438_v35 }
  0x9c   : > { %v736_v26 = vpop.f32.mrf.mxu2 }
  0x9d   : > { %v325_v22 = vpop.f32.mrf.mxu0  ;;  %v345_v24 = vpop.f32.mrf.mxu1 }
  0x9e   : > { %v742_v33 = vpop.f32.mrf.mxu3  ;;  %v440_v37 = vmul.f32 %v325_v22, %v325_v22  ;;  %v401_v40 = vadd.f32 %v400_v36, %v325_v22  ;;  %v448_v5 = vmul.f32 %v345_v24, %v345_v24 }
  0xa0   : > { %v471_v43 = vadd.f32 %v470_v39, %v440_v37 }
  0xa4   : > { %v740_v30 = vpop.f32.mrf.mxu2 }
  0xa5   : > { %v327_v25 = vpop.f32.mrf.mxu0  ;;  %v347_v27 = vpop.f32.mrf.mxu1  ;;  %v456_v39 = vmul.f32 %v740_v30, %v740_v30 }
  0xa6   : > { %v441_v41 = vmul.f32 %v327_v25, %v327_v25  ;;  %v402_v44 = vadd.f32 %v401_v40, %v327_v25  ;;  %v746_v50 = vpop.f32.mrf.mxu3  ;;  %v449_v8 = vmul.f32 %v347_v27, %v347_v27 }
  0xa8   : > { %v472_v47 = vadd.f32 %v471_v43, %v441_v41 }
  0xac   : > { %v744_v38 = vpop.f32.mrf.mxu2 }
  0xad   : > { %v330_v28 = vpop.f32.mrf.mxu0  ;;  %v350_v32 = vpop.f32.mrf.mxu1 }
  0xae   : > { %v442_v45 = vmul.f32 %v330_v28, %v330_v28  ;;  %v403_v48 = vadd.f32 %v402_v44, %v330_v28  ;;  %v387_v4 = vpop.f32.mrf.mxu3  ;;  %v450_v12 = vmul.f32 %v350_v32, %v350_v32 }
  0xb0   : > { %v473_v51 = vadd.f32 %v472_v47, %v442_v45 }
  0xb4   : > { %v370_v57 = vpop.f32.mrf.mxu2 }
  0xb5   : > { %v332_v31 = vpop.f32.mrf.mxu0  ;;  %v352_v46 = vpop.f32.mrf.mxu1  ;;  %v458_v45 = vmul.f32 %v370_v57, %v370_v57 }
  0xb6   : > { %v443_v49 = vmul.f32 %v332_v31, %v332_v31  ;;  %v404_v52 = vadd.f32 %v403_v48, %v332_v31  ;;  %v451_v15 = vmul.f32 %v352_v46, %v352_v46 }
  0xb8   : > { %v474_v54 = vadd.f32 %v473_v51, %v443_v49 }
  0xbc   : > { %v372_v11 = vpop.f32.mrf.mxu2 }
  0xbd   : > { %v335_v42 = vpop.f32.mrf.mxu0  ;;  %v355_v0 = vpop.f32.mrf.mxu1  ;;  %v459_v49 = vmul.f32 %v372_v11, %v372_v11 }
  0xbe   : > { %v444_v53 = vmul.f32 %v335_v42, %v335_v42  ;;  %v405_v55 = vadd.f32 %v404_v52, %v335_v42  ;;  %v452_v20 = vmul.f32 %v355_v0, %v355_v0  ;;  %v457_v42 = vmul.f32 %v744_v38, %v744_v38 }
  0xc0   : > { %v475_v58 = vadd.f32 %v474_v54, %v444_v53 }
  0xc4   : > { %v375_v35 = vpop.f32.mrf.mxu2 }
  0xc5   : > { %v337_v56 = vpop.f32.mrf.mxu0  ;;  %v357_v18 = vpop.f32.mrf.mxu1  ;;  %v460_v54 = vmul.f32 %v375_v35, %v375_v35 }
  0xc6   : > { %v406_v59 = vadd.f32 %v405_v55, %v337_v56  ;;  %v445_v60 = vmul.f32 %v337_v56, %v337_v56  ;;  %v453_v31 = vmul.f32 %v357_v18, %v357_v18 }
  0xc8   : > { %v407_v62 = vadd.f32 %v406_v59, %v340_v19  ;;  %v476_v63 = vadd.f32 %v475_v58, %v445_v60  ;;  %v462_v58 = vmul.f32 %v738_v29, %v738_v29 }
  0xca   : > { %v408_v2 = vadd.f32 %v407_v62, %v342_v21  ;;  %v477_v3 = vadd.f32 %v476_v63, %v446_v61  ;;  %v390_v21 = vpop.f32.mrf.mxu3  ;;  %v464_v63 = vmul.f32 %v746_v50, %v746_v50 }
  0xcc   : > { %v409_v6 = vadd.f32 %v408_v2, %v345_v24  ;;  %v478_v7 = vadd.f32 %v477_v3, %v447_v1  ;;  %v454_v24 = vmul.f32 %v734_v23, %v734_v23  ;;  %v377_v51 = vpop.f32.mrf.mxu2  ;;  %v465_v2 = vmul.f32 %v387_v4, %v387_v4 }
  0xcd   : > { %v461_v56 = vmul.f32 %v377_v51, %v377_v51 }
  0xce   : > { %v479_v9 = vadd.f32 %v478_v7, %v448_v5  ;;  %v410_v10 = vadd.f32 %v409_v6, %v347_v27  ;;  %v466_v6 = vmul.f32 %v390_v21, %v390_v21 }
  0xd0   : > { %v411_v13 = vadd.f32 %v410_v10, %v350_v32  ;;  %v480_v14 = vadd.f32 %v479_v9, %v449_v8  ;;  %v455_v32 = vmul.f32 %v736_v26, %v736_v26 }
  0xd2   : > { %v412_v16 = vadd.f32 %v411_v13, %v352_v46  ;;  %v481_v17 = vadd.f32 %v480_v14, %v450_v12  ;;  %v392_v44 = vpop.f32.mrf.mxu3 }
  0xd3   : > { %v467_v9 = vmul.f32 %v392_v44, %v392_v44 }
  0xd4   : > { %v413_v19 = vadd.f32 %v412_v16, %v355_v0  ;;  %v482_v22 = vadd.f32 %v481_v17, %v451_v15 }
  0xd6   : > { %v483_v25 = vadd.f32 %v482_v22, %v452_v20  ;;  %v414_v28 = vadd.f32 %v413_v19, %v357_v18 }
  0xd8   : > { %v415_v27 = vadd.f32 %v414_v28, %v734_v23  ;;  %v484_v34 = vadd.f32 %v483_v25, %v453_v31 }
  0xda   : > { %v416_v36 = vadd.f32 %v415_v27, %v736_v26  ;;  %v485_v37 = vadd.f32 %v484_v34, %v454_v24  ;;  %v395_v60 = vpop.f32.mrf.mxu3 }
  0xdb   : > { %v468_v13 = vmul.f32 %v395_v60, %v395_v60 }
  0xdc   : > { %v417_v40 = vadd.f32 %v416_v36, %v740_v30  ;;  %v486_v41 = vadd.f32 %v485_v37, %v455_v32 }
  0xde   : > { %v487_v43 = vadd.f32 %v486_v41, %v456_v39  ;;  %v418_v23 = vadd.f32 %v417_v40, %v744_v38 }
  0xe0   : > { %v419_v46 = vadd.f32 %v418_v23, %v370_v57  ;;  %v488_v47 = vadd.f32 %v487_v43, %v457_v42  ;;  %v463_v57 = vmul.f32 %v742_v33, %v742_v33 }
  0xe2   : > { %v420_v48 = vadd.f32 %v419_v46, %v372_v11  ;;  %v489_v26 = vadd.f32 %v488_v47, %v458_v45  ;;  %v397_v11 = vpop.f32.mrf.mxu3 }
  0xe4   : > { %v490_v52 = vadd.f32 %v489_v26, %v459_v49  ;;  %v421_v53 = vadd.f32 %v420_v48, %v375_v35 }
  0xe6   : > { %v491_v55 = vadd.f32 %v490_v52, %v460_v54  ;;  %v422_v30 = vadd.f32 %v421_v53, %v377_v51 }
  0xe8   : > { %v423_v59 = vadd.f32 %v422_v30, %v738_v29  ;;  %v492_v38 = vadd.f32 %v491_v55, %v461_v56 }
  0xea   : > { %v424_v61 = vadd.f32 %v423_v59, %v742_v33  ;;  %v493_v62 = vadd.f32 %v492_v38, %v462_v58 }
  0xec   : > { %v425_v0 = vadd.f32 %v424_v61, %v746_v50  ;;  %v494_v1 = vadd.f32 %v493_v62, %v463_v57  ;;  %v469_v50 = vmul.f32 %v397_v11, %v397_v11 }
  0xee   : > { %v495_v3 = vadd.f32 %v494_v1, %v464_v63  ;;  %v426_v5 = vadd.f32 %v425_v0, %v387_v4 }
  0xf0   : > { %v427_v29 = vadd.f32 %v426_v5, %v390_v21  ;;  %v496_v7 = vadd.f32 %v495_v3, %v465_v2 }
  0xf2   : > { %v428_v8 = vadd.f32 %v427_v29, %v392_v44  ;;  %v497_v10 = vadd.f32 %v496_v7, %v466_v6 }
  0xf4   : > { %v498_v33 = vadd.f32 %v497_v10, %v467_v9  ;;  %v429_v12 = vadd.f32 %v428_v8, %v395_v60 }
  0xf6   : > { %v499_v14 = vadd.f32 %v498_v33, %v468_v13  ;;  %v430_v15 = vadd.f32 %v429_v12, %v397_v11 }
  0xf8   : > { %v431_v16 = vrot.slane %v430_v15, 4  ;;  %v500_v17 = vadd.f32 %v499_v14, %v469_v50 }
  0xfa   : > { %v432_v18 = vadd.f32 %v431_v16, %v430_v15  ;;  %v501_v4 = vrot.slane %v500_v17, 4 }
  0xfc   : > { %v433_v19 = vrot.slane %v432_v18, 2  ;;  %v502_v20 = vadd.f32 %v501_v4, %v500_v17 }
  0xfe   : > { %v434_v22 = vadd.f32 %v433_v19, %v432_v18  ;;  %v503_v21 = vrot.slane %v502_v20, 2 }
 0x100   : > { %v435_v25 = vrot.slane %v434_v22, 1  ;;  %v504_v28 = vadd.f32 %v503_v21, %v502_v20 }
 0x102   : > { %v436_v31 = vadd.f32 %v435_v25, %v434_v22  ;;  %v505_v24 = vrot.slane %v504_v28, 1 }
 0x104   : > { %437 = vst [vmem:[%s143_s21] sm:$0x1] %v436_v31  ;;  %v506_v27 = vadd.f32 %v505_v24, %v504_v28 }
 0x106   : > { %507 = vst [vmem:[%s143_s21 + $0x1] sm:$0x1] %v506_v27 }
 0x107 PF: > { %s12_s9 = sadd.s32 1, %s684_s9  }
 0x108   : > { %p9_p5 = scmp.ge.s32.totalorder %s12_s9, 4  }
 0x10a   :  { %11 = sbr.rel (!%p9_p5) target bundleno = 1 (0x1), region = 58 }

// kernel: trans_conv.3
= control target key start
LH: loop header
LB: loop body
LE: loop exit
PB: predicated region body
PF: predicated region fallthrough
CT: control target
= control target key end

     0   :  { %s802_s15 = smov 0   ;;  %s950_s0 = inlined_call_operand.vmem [shape: bf16[512,4], index: 0, kind: input, shape index: {}]   ;;  %s951_s1 = inlined_call_operand.vmem [shape: bf16[4,128], index: 1, kind: input, shape index: {}]   ;;  %s952_s2 = inlined_call_operand.vmem [shape: f32[1,128], index: 2, kind: input, shape index: {}]   ;;  %s953_s3 = inlined_call_operand.vmem [shape: f32[1,128], index: 3, kind: input, shape index: {}]   ;;  %s954_s4 = inlined_call_operand.vmem [shape: f32[512,128], index: 4, kind: output, shape index: {}]  }
   0x1 LB: > { %s649_s16 = sadd.s32 4294967295, %s775_s15   ;;  %p653_p0 = scmp.ge.s32.totalorder %s775_s15, 1  ;;  %s775_s15 = sphi %s802_s15, %s14_s15  }
   0x2   : > { %p163_p1 = scmp.lt.s32.totalorder %s775_s15, 3 }
   0x4   : > { %p164_p2 = pnand %p653_p0, %p163_p1 }
   0x5   : > { %s654_s19 = sshll.u32 (!%p164_p2), %s649_s16, 5 }
   0x6   : > { %167 = sbr.rel (%p164_p2) target bundleno = 213 (0xd5), region = 36  ;;  %p190_p3 = scmp.lt.s32.totalorder (!%p164_p2), %s654_s19, 63 }
   0xb   : > { %v234_v0 = vld [vmem:[%s951_s1] sm:$0x3]  ;;  %vm364_vm0 = vcmask 1041408   ;;  %s956_s19 = smov (!%p190_p3, %s654_s19), 63  ;;  %vm315_vm1 = vcmask 31744  }
   0xc   : > { %v366_v1 = vsel %vm364_vm0, %v234_v0, 0  ;;  %s655_s20 = sshll.u32 %s956_s19, 2  ;;  %v838_v18 = vld [vmem:[%s952_s2] ss:$0 sm:$0xff]  ;;  %s657_s28 = sshll.u32 %s956_s19, 3 }
   0xd   : > { %375 = vmatpush.bf16.msra.mxu0 %v366_v1  ;;  %756 = vmatpush.bf16.msra.mxu1 %v366_v1  ;;  %s193_s23 = scalar_lea.vmem %s950_s0, %s655_s20  ;;  %v843_v19 = vld [vmem:[%s953_s3] ss:$0 sm:$0xff]  ;;  %s853_s5 = scalar_lea.vmem %s954_s4, %s657_s28 }
   0xe   : > { %757 = vmatpush.bf16.msra.mxu2 %v366_v1  ;;  %758 = vmatpush.bf16.msra.mxu3 %v366_v1  ;;  %v740_v2 = vld [vmem:[%s193_s23] sm:$0xff]  ;;  %v741_v6 = vld [vmem:[%s193_s23 + $0x8] sm:$0xff]  ;;  %v742_v10 = vld [vmem:[%s193_s23 + $0x10] sm:$0xff] }
   0xf   : > { %v744_v3 = vld [vmem:[%s193_s23 + $0x20] sm:$0xff]  ;;  %v745_v7 = vld [vmem:[%s193_s23 + $0x28] sm:$0xff]  ;;  %v746_v11 = vld [vmem:[%s193_s23 + $0x30] sm:$0xff] }
  0x10   : > { %v748_v4 = vld [vmem:[%s193_s23 + $0x40] sm:$0xff]  ;;  %722 = vmatmul.msk.bf16.vlgmr.msra.gmra.mxu0 %vm315_vm1, %v740_v2  ;;  %726 = vmatmul.msk.bf16.vlgmr.msra.gmra.mxu1 %vm315_vm1, %v744_v3  ;;  %v749_v8 = vld [vmem:[%s193_s23 + $0x48] sm:$0xff]  ;;  %v750_v12 = vld [vmem:[%s193_s23 + $0x50] sm:$0xff] }
  0x11   : > { %v752_v5 = vld [vmem:[%s193_s23 + $0x60] sm:$0xff]  ;;  %730 = vmatmul.msk.bf16.vlgmr.msra.gmra.mxu2 %vm315_vm1, %v748_v4  ;;  %v753_v9 = vld [vmem:[%s193_s23 + $0x68] sm:$0xff]  ;;  %v754_v13 = vld [vmem:[%s193_s23 + $0x70] sm:$0xff] }
  0x12   : > { %734 = vmatmul.msk.bf16.vlgmr.msra.gmra.mxu3 %vm315_vm1, %v752_v5  ;;  %v743_v14 = vld [vmem:[%s193_s23 + $0x18] sm:$0xff] }
  0x13   : > { %v747_v15 = vld [vmem:[%s193_s23 + $0x38] sm:$0xff] }
  0x14   : > { %v751_v16 = vld [vmem:[%s193_s23 + $0x58] sm:$0xff] }
  0x15   : > { %v755_v17 = vld [vmem:[%s193_s23 + $0x78] sm:$0xff] }
  0x20   : > { %723 = vmatmul.msk.bf16.gmra.mxu0 %vm315_vm1, %v741_v6  ;;  %727 = vmatmul.msk.bf16.gmra.mxu1 %vm315_vm1, %v745_v7 }
  0x21   : > { %731 = vmatmul.msk.bf16.gmra.mxu2 %vm315_vm1, %v749_v8 }
  0x22   : > { %735 = vmatmul.msk.bf16.gmra.mxu3 %vm315_vm1, %v753_v9 }
  0x30   : > { %724 = vmatmul.msk.bf16.gmra.mxu0 %vm315_vm1, %v742_v10  ;;  %728 = vmatmul.msk.bf16.gmra.mxu1 %vm315_vm1, %v746_v11 }
  0x31   : > { %732 = vmatmul.msk.bf16.gmra.mxu2 %vm315_vm1, %v750_v12 }
  0x32   : > { %736 = vmatmul.msk.bf16.gmra.mxu3 %vm315_vm1, %v754_v13 }
  0x40   : > { %725 = vmatmul.msk.bf16.gmra.mxu0 %vm315_vm1, %v743_v14  ;;  %729 = vmatmul.msk.bf16.gmra.mxu1 %vm315_vm1, %v747_v15 }
  0x41   : > { %733 = vmatmul.msk.bf16.gmra.mxu2 %vm315_vm1, %v751_v16 }
  0x42   : > { %737 = vmatmul.msk.bf16.gmra.mxu3 %vm315_vm1, %v755_v17 }
  0x8d   : > { %v377_v20 = vpop.f32.mrf.mxu0  ;;  %v397_v21 = vpop.f32.mrf.mxu1 }
  0x8e   : > { %v461_v22 = vmul.f32 %v838_v18, %v377_v20  ;;  %v469_v23 = vmul.f32 %v838_v18, %v397_v21 }
  0x90   : > { %v497_v24 = vadd.f32 %v843_v19, %v461_v22  ;;  %v505_v25 = vadd.f32 %v843_v19, %v469_v23 }
  0x92   : > { %v529_v26 = vmax.f32 %v497_v24, 0.0  ;;  %v537_v27 = vmax.f32 %v505_v25, 0.0 }
  0x94   : > { %561 = vst [vmem:[%s853_s5] sm:$0xff] %v529_v26  ;;  %v417_v28 = vpop.f32.mrf.mxu2 }
  0x95   : > { %v437_v29 = vpop.f32.mrf.mxu3  ;;  %569 = vst [vmem:[%s853_s5 + $0x40] sm:$0xff] %v537_v27  ;;  %v477_v30 = vmul.f32 %v838_v18, %v417_v28  ;;  %v379_v32 = vpop.f32.mrf.mxu0 }
  0x96   : > { %v485_v31 = vmul.f32 %v838_v18, %v437_v29  ;;  %v399_v33 = vpop.f32.mrf.mxu1  ;;  %v462_v34 = vmul.f32 %v838_v18, %v379_v32 }
  0x97   : > { %v470_v35 = vmul.f32 %v838_v18, %v399_v33  ;;  %v513_v36 = vadd.f32 %v843_v19, %v477_v30 }
  0x98   : > { %v521_v37 = vadd.f32 %v843_v19, %v485_v31  ;;  %v498_v38 = vadd.f32 %v843_v19, %v462_v34 }
  0x99   : > { %v506_v39 = vadd.f32 %v843_v19, %v470_v35  ;;  %v545_v40 = vmax.f32 %v513_v36, 0.0 }
  0x9a   : > { %v553_v41 = vmax.f32 %v521_v37, 0.0  ;;  %v530_v42 = vmax.f32 %v498_v38, 0.0 }
  0x9b   : > { %v538_v43 = vmax.f32 %v506_v39, 0.0  ;;  %577 = vst [vmem:[%s853_s5 + $0x80] sm:$0xff] %v545_v40 }
  0x9c   : > { %585 = vst [vmem:[%s853_s5 + $0xc0] sm:$0xff] %v553_v41  ;;  %v419_v44 = vpop.f32.mrf.mxu2 }
  0x9d   : > { %v439_v45 = vpop.f32.mrf.mxu3  ;;  %562 = vst [vmem:[%s853_s5 + $0x8] sm:$0xff] %v530_v42  ;;  %v478_v46 = vmul.f32 %v838_v18, %v419_v44  ;;  %v382_v48 = vpop.f32.mrf.mxu0 }
  0x9e   : > { %v486_v47 = vmul.f32 %v838_v18, %v439_v45  ;;  %v402_v49 = vpop.f32.mrf.mxu1  ;;  %570 = vst [vmem:[%s853_s5 + $0x48] sm:$0xff] %v538_v43  ;;  %v463_v50 = vmul.f32 %v838_v18, %v382_v48 }
  0x9f   : > { %v471_v51 = vmul.f32 %v838_v18, %v402_v49  ;;  %v514_v52 = vadd.f32 %v843_v19, %v478_v46 }
  0xa0   : > { %v522_v53 = vadd.f32 %v843_v19, %v486_v47  ;;  %v499_v54 = vadd.f32 %v843_v19, %v463_v50 }
  0xa1   : > { %v507_v55 = vadd.f32 %v843_v19, %v471_v51  ;;  %v546_v56 = vmax.f32 %v514_v52, 0.0 }
  0xa2   : > { %v554_v57 = vmax.f32 %v522_v53, 0.0  ;;  %v531_v58 = vmax.f32 %v499_v54, 0.0 }
  0xa3   : > { %v539_v59 = vmax.f32 %v507_v55, 0.0  ;;  %578 = vst [vmem:[%s853_s5 + $0x88] sm:$0xff] %v546_v56 }
  0xa4   : > { %586 = vst [vmem:[%s853_s5 + $0xc8] sm:$0xff] %v554_v57  ;;  %v422_v60 = vpop.f32.mrf.mxu2 }
  0xa5   : > { %v442_v61 = vpop.f32.mrf.mxu3  ;;  %563 = vst [vmem:[%s853_s5 + $0x10] sm:$0xff] %v531_v58  ;;  %v479_v62 = vmul.f32 %v838_v18, %v422_v60  ;;  %v384_v0 = vpop.f32.mrf.mxu0 }
  0xa6   : > { %v487_v63 = vmul.f32 %v838_v18, %v442_v61  ;;  %v404_v1 = vpop.f32.mrf.mxu1  ;;  %571 = vst [vmem:[%s853_s5 + $0x50] sm:$0xff] %v539_v59  ;;  %v464_v2 = vmul.f32 %v838_v18, %v384_v0 }
  0xa7   : > { %v472_v3 = vmul.f32 %v838_v18, %v404_v1  ;;  %v515_v4 = vadd.f32 %v843_v19, %v479_v62 }
  0xa8   : > { %v523_v5 = vadd.f32 %v843_v19, %v487_v63  ;;  %v500_v6 = vadd.f32 %v843_v19, %v464_v2 }
  0xa9   : > { %v508_v7 = vadd.f32 %v843_v19, %v472_v3  ;;  %v547_v8 = vmax.f32 %v515_v4, 0.0 }
  0xaa   : > { %v555_v9 = vmax.f32 %v523_v5, 0.0  ;;  %v532_v10 = vmax.f32 %v500_v6, 0.0 }
  0xab   : > { %v540_v11 = vmax.f32 %v508_v7, 0.0  ;;  %579 = vst [vmem:[%s853_s5 + $0x90] sm:$0xff] %v547_v8 }
  0xac   : > { %587 = vst [vmem:[%s853_s5 + $0xd0] sm:$0xff] %v555_v9  ;;  %v424_v12 = vpop.f32.mrf.mxu2 }
  0xad   : > { %v444_v13 = vpop.f32.mrf.mxu3  ;;  %564 = vst [vmem:[%s853_s5 + $0x18] sm:$0xff] %v532_v10  ;;  %v480_v14 = vmul.f32 %v838_v18, %v424_v12  ;;  %v387_v16 = vpop.f32.mrf.mxu0 }
  0xae   : > { %v488_v15 = vmul.f32 %v838_v18, %v444_v13  ;;  %v407_v17 = vpop.f32.mrf.mxu1  ;;  %572 = vst [vmem:[%s853_s5 + $0x58] sm:$0xff] %v540_v11  ;;  %v465_v20 = vmul.f32 %v838_v18, %v387_v16 }
  0xaf   : > { %v473_v21 = vmul.f32 %v838_v18, %v407_v17  ;;  %v516_v22 = vadd.f32 %v843_v19, %v480_v14 }
  0xb0   : > { %v524_v23 = vadd.f32 %v843_v19, %v488_v15  ;;  %v501_v24 = vadd.f32 %v843_v19, %v465_v20 }
  0xb1   : > { %v509_v25 = vadd.f32 %v843_v19, %v473_v21  ;;  %v548_v26 = vmax.f32 %v516_v22, 0.0 }
  0xb2   : > { %v556_v27 = vmax.f32 %v524_v23, 0.0  ;;  %v533_v28 = vmax.f32 %v501_v24, 0.0 }
  0xb3   : > { %v541_v29 = vmax.f32 %v509_v25, 0.0  ;;  %580 = vst [vmem:[%s853_s5 + $0x98] sm:$0xff] %v548_v26 }
  0xb4   : > { %588 = vst [vmem:[%s853_s5 + $0xd8] sm:$0xff] %v556_v27  ;;  %v427_v30 = vpop.f32.mrf.mxu2 }
  0xb5   : > { %v447_v31 = vpop.f32.mrf.mxu3  ;;  %565 = vst [vmem:[%s853_s5 + $0x20] sm:$0xff] %v533_v28  ;;  %v481_v32 = vmul.f32 %v838_v18, %v427_v30  ;;  %v389_v34 = vpop.f32.mrf.mxu0 }
  0xb6   : > { %v489_v33 = vmul.f32 %v838_v18, %v447_v31  ;;  %v409_v35 = vpop.f32.mrf.mxu1  ;;  %573 = vst [vmem:[%s853_s5 + $0x60] sm:$0xff] %v541_v29  ;;  %v466_v36 = vmul.f32 %v838_v18, %v389_v34 }
  0xb7   : > { %v474_v37 = vmul.f32 %v838_v18, %v409_v35  ;;  %v517_v38 = vadd.f32 %v843_v19, %v481_v32 }
  0xb8   : > { %v525_v39 = vadd.f32 %v843_v19, %v489_v33  ;;  %v502_v40 = vadd.f32 %v843_v19, %v466_v36 }
  0xb9   : > { %v510_v41 = vadd.f32 %v843_v19, %v474_v37  ;;  %v549_v42 = vmax.f32 %v517_v38, 0.0 }
  0xba   : > { %v557_v43 = vmax.f32 %v525_v39, 0.0  ;;  %v534_v44 = vmax.f32 %v502_v40, 0.0 }
  0xbb   : > { %v542_v45 = vmax.f32 %v510_v41, 0.0  ;;  %581 = vst [vmem:[%s853_s5 + $0xa0] sm:$0xff] %v549_v42 }
  0xbc   : > { %589 = vst [vmem:[%s853_s5 + $0xe0] sm:$0xff] %v557_v43  ;;  %v429_v46 = vpop.f32.mrf.mxu2 }
  0xbd   : > { %v449_v47 = vpop.f32.mrf.mxu3  ;;  %566 = vst [vmem:[%s853_s5 + $0x28] sm:$0xff] %v534_v44  ;;  %v482_v48 = vmul.f32 %v838_v18, %v429_v46  ;;  %v392_v50 = vpop.f32.mrf.mxu0 }
  0xbe   : > { %v490_v49 = vmul.f32 %v838_v18, %v449_v47  ;;  %v412_v51 = vpop.f32.mrf.mxu1  ;;  %574 = vst [vmem:[%s853_s5 + $0x68] sm:$0xff] %v542_v45  ;;  %v467_v52 = vmul.f32 %v838_v18, %v392_v50 }
  0xbf   : > { %v475_v53 = vmul.f32 %v838_v18, %v412_v51  ;;  %v518_v54 = vadd.f32 %v843_v19, %v482_v48 }
  0xc0   : > { %v526_v55 = vadd.f32 %v843_v19, %v490_v49  ;;  %v503_v56 = vadd.f32 %v843_v19, %v467_v52 }
  0xc1   : > { %v511_v57 = vadd.f32 %v843_v19, %v475_v53  ;;  %v550_v58 = vmax.f32 %v518_v54, 0.0 }
  0xc2   : > { %v558_v59 = vmax.f32 %v526_v55, 0.0  ;;  %v535_v60 = vmax.f32 %v503_v56, 0.0 }
  0xc3   : > { %v543_v61 = vmax.f32 %v511_v57, 0.0  ;;  %582 = vst [vmem:[%s853_s5 + $0xa8] sm:$0xff] %v550_v58 }
  0xc4   : > { %590 = vst [vmem:[%s853_s5 + $0xe8] sm:$0xff] %v558_v59  ;;  %v432_v62 = vpop.f32.mrf.mxu2 }
  0xc5   : > { %v452_v63 = vpop.f32.mrf.mxu3  ;;  %567 = vst [vmem:[%s853_s5 + $0x30] sm:$0xff] %v535_v60  ;;  %v483_v0 = vmul.f32 %v838_v18, %v432_v62  ;;  %v394_v2 = vpop.f32.mrf.mxu0 }
  0xc6   : > { %v491_v1 = vmul.f32 %v838_v18, %v452_v63  ;;  %v414_v3 = vpop.f32.mrf.mxu1  ;;  %575 = vst [vmem:[%s853_s5 + $0x70] sm:$0xff] %v543_v61  ;;  %v468_v4 = vmul.f32 %v838_v18, %v394_v2 }
  0xc7   : > { %v476_v5 = vmul.f32 %v838_v18, %v414_v3  ;;  %v519_v6 = vadd.f32 %v843_v19, %v483_v0 }
  0xc8   : > { %v527_v7 = vadd.f32 %v843_v19, %v491_v1  ;;  %v504_v8 = vadd.f32 %v843_v19, %v468_v4 }
  0xc9   : > { %v512_v9 = vadd.f32 %v843_v19, %v476_v5  ;;  %v551_v10 = vmax.f32 %v519_v6, 0.0 }
  0xca   : > { %v559_v11 = vmax.f32 %v527_v7, 0.0  ;;  %v536_v12 = vmax.f32 %v504_v8, 0.0 }
  0xcb   : > { %v544_v13 = vmax.f32 %v512_v9, 0.0  ;;  %583 = vst [vmem:[%s853_s5 + $0xb0] sm:$0xff] %v551_v10 }
  0xcc   : > { %591 = vst [vmem:[%s853_s5 + $0xf0] sm:$0xff] %v559_v11  ;;  %v434_v14 = vpop.f32.mrf.mxu2 }
  0xcd   : > { %v454_v15 = vpop.f32.mrf.mxu3  ;;  %568 = vst [vmem:[%s853_s5 + $0x38] sm:$0xff] %v536_v12  ;;  %v484_v16 = vmul.f32 %v838_v18, %v434_v14 }
  0xce   : > { %v492_v17 = vmul.f32 %v838_v18, %v454_v15  ;;  %576 = vst [vmem:[%s853_s5 + $0x78] sm:$0xff] %v544_v13 }
  0xcf   : > { %v520_v20 = vadd.f32 %v843_v19, %v484_v16 }
  0xd0   : > { %v528_v21 = vadd.f32 %v843_v19, %v492_v17 }
  0xd1   : > { %v552_v22 = vmax.f32 %v520_v20, 0.0 }
  0xd2   : > { %v560_v23 = vmax.f32 %v528_v21, 0.0 }
  0xd3   : > { %584 = vst [vmem:[%s853_s5 + $0xb8] sm:$0xff] %v552_v22 }
  0xd4   : > { %592 = vst [vmem:[%s853_s5 + $0xf8] sm:$0xff] %v560_v23 }
  0xd5 PF: > { %s14_s15 = sadd.s32 1, %s775_s15  }
  0xd6   : > { %p11_p4 = scmp.ge.s32.totalorder %s14_s15, 4  }
  0xd8   :  { %13 = sbr.rel (!%p11_p4) target bundleno = 1 (0x1), region = 66 }

</bundles_post_ra>
